<compile_context>
chip_gen: v5e
topology: v5e:2x2
jax: 0.10.0
libtpu: 0.0.40
codegen_flags: <defaults>
</compile_context>

<pallas_src>
import functools

import jax
import jax.numpy as jnp
from jax.experimental import pallas as pl
from jax.experimental.pallas import tpu as pltpu


_LANE = 128   # lane width (last-dim alignment)


def _round_up(x, m):
    return (x + m - 1) // m * m


def _choose_b_tile(batch, requested):
    bt = _round_up(min(requested, _round_up(batch, 8)), 8)
    # Keep >= 2 parallel grid steps when the batch allows it (v7x: 2 TensorCores).
    if _round_up(batch, bt) == bt and bt > 8:
        bt = _round_up(max(bt // 2, 8), 8)
    return bt


def net_kernel(ids_ref,          # [B_pad * S] int32, SMEM (scalar prefetch)
               emb_hbm,          # [V, D_pad] f32, HBM (pl.ANY) — DMA-gathered
               w1_ref, b1_ref,   # [D_pad, H_pad], [1, H_pad] VMEM (resident)
               w2_ref, b2_ref,   # [H_pad, O_pad], [1, O_pad] VMEM (resident)
               out_ref,          # [b_tile, O_pad] VMEM
               gbuf,             # [2, b_tile, D_pad] f32 VMEM double-buffered slabs
               acc,              # [b_tile, D_pad] f32 VMEM mean-pool accumulator
               sem,              # DMA semaphores, shape (2,)
               *, b_tile, seq_len):
    tile = pl.program_id(0)
    base = tile * (b_tile * seq_len)   # flat ids offset for this batch tile

    def start_slab(s_idx, buf):
        # Fire all b_tile row gathers for sequence position s_idx against one sem.
        @pl.loop(0, b_tile)
        def _(b_loc):
            tok = ids_ref[base + b_loc * seq_len + s_idx]
            pltpu.make_async_copy(
                emb_hbm.at[pl.ds(tok, 1), :],
                gbuf.at[buf, pl.ds(b_loc, 1), :],
                sem.at[buf],
            ).start()

    def wait_slab(buf):
        # Aggregate wait: total bytes == sum of the b_tile single-row copies that
        # signaled sem.at[buf]  (b_tile * D_pad * 4 bytes).
        pltpu.make_async_copy(gbuf.at[buf], gbuf.at[buf], sem.at[buf]).wait()

    # Prime slab 0, zero the accumulator while it is in flight.
    start_slab(0, 0)
    acc[...] = jnp.zeros_like(acc)

    @pl.loop(0, seq_len)
    def _(s):
        buf = s & 1

        # Start next slab into the other buffer before waiting on this one.
        @pl.when(s + 1 < seq_len)
        def _():
            start_slab(s + 1, 1 - buf)

        wait_slab(buf)
        acc[...] += gbuf[buf]          # VPU add overlaps the in-flight DMAs

    pooled = acc[...] * (1.0 / seq_len)                       # [b_tile, D_pad]

    # linear1 + ReLU
    h = jnp.dot(pooled, w1_ref[...],
                preferred_element_type=jnp.float32) + b1_ref[...]
    h = jnp.maximum(h, 0.0)

    # linear2 + Sigmoid  (lane-dense [b_tile, O_pad] store)
    o = jnp.dot(h, w2_ref[...],
                preferred_element_type=jnp.float32) + b2_ref[...]
    out_ref[...] = jax.nn.sigmoid(o)


def prepare_params(emb_table, w1, b1, w2, b2):
    """Pad the table / weights to lane-aligned shapes ONCE (outside the per-call path)."""
    V, D = emb_table.shape
    H = w1.shape[-1]
    O = w2.shape[-1]
    D_pad = _round_up(D, _LANE)
    H_pad = _round_up(H, _LANE)
    O_pad = _round_up(O, _LANE)

    f32 = jnp.float32
    # Zero-padding keeps the math exact; padded rows/cols are sliced off later.
    emb_p = jnp.zeros((V, D_pad), f32).at[:, :D].set(emb_table.astype(f32))
    w1_p = jnp.zeros((D_pad, H_pad), f32).at[:D, :H].set(w1.astype(f32))
    b1_p = jnp.zeros((1, H_pad), f32).at[:, :H].set(b1.reshape(1, -1).astype(f32))
    w2_p = jnp.zeros((H_pad, O_pad), f32).at[:H, :O].set(w2.astype(f32))
    b2_p = jnp.zeros((1, O_pad), f32).at[:, :O].set(b2.reshape(1, -1).astype(f32))

    return {"emb": emb_p, "w1": w1_p, "b1": b1_p, "w2": w2_p, "b2": b2_p,
            "dims": (V, D, H, O)}


def net_forward(ids, params, *, b_tile=128):
    B, S = ids.shape
    V, D, H, O = params["dims"]
    emb_p, w1_p, b1_p, w2_p, b2_p = (params["emb"], params["w1"], params["b1"],
                                     params["w2"], params["b2"])
    D_pad = emb_p.shape[1]
    H_pad = w1_p.shape[1]
    O_pad = w2_p.shape[1]

    b_tile = _choose_b_tile(B, b_tile)
    B_pad = _round_up(B, b_tile)

    # Clamp guards against out-of-range token ids driving an OOB HBM DMA
    # (PyTorch would raise; here we clamp).  Flatten to 1D to keep SMEM dense.
    ids_c = jnp.clip(ids.astype(jnp.int32), 0, V - 1)
    ids_flat = jnp.zeros((B_pad, S), jnp.int32).at[:B, :].set(ids_c).reshape(-1)

    grid = (B_pad // b_tile,)
    kernel = functools.partial(net_kernel, b_tile=b_tile, seq_len=S)

    # Explicit VMEM budget: double-buffered weights + gather slabs + acc + output,
    # with 2x headroom, capped at 56 MiB (leaves headroom on v7x's 64 MiB VMEM).
    weight_bytes = 4 * (D_pad * H_pad + H_pad + H_pad * O_pad + O_pad)
    scratch_bytes = 4 * (3 * b_tile * D_pad)
    out_bytes = 4 * b_tile * O_pad
    vmem_limit = int(min(max(2 * (2 * weight_bytes + scratch_bytes + 2 * out_bytes),
                             32 * 1024 * 1024),
                         56 * 1024 * 1024))

    out = pl.pallas_call(
        kernel,
        out_shape=jax.ShapeDtypeStruct((B_pad, O_pad), jnp.float32),
        grid_spec=pltpu.PrefetchScalarGridSpec(
            num_scalar_prefetch=1,                # flat ids -> SMEM, drives the gather
            grid=grid,
            in_specs=[
                pl.BlockSpec(memory_space=pl.ANY),                       # table stays in HBM
                pl.BlockSpec((D_pad, H_pad), lambda i, _ids: (0, 0)),    # resident weights
                pl.BlockSpec((1, H_pad), lambda i, _ids: (0, 0)),
                pl.BlockSpec((H_pad, O_pad), lambda i, _ids: (0, 0)),
                pl.BlockSpec((1, O_pad), lambda i, _ids: (0, 0)),
            ],
            out_specs=pl.BlockSpec((b_tile, O_pad), lambda i, _ids: (i, 0)),
            scratch_shapes=[
                pltpu.VMEM((2, b_tile, D_pad), jnp.float32),   # double-buffered slabs
                pltpu.VMEM((b_tile, D_pad), jnp.float32),      # mean-pool accumulator
                pltpu.SemaphoreType.DMA((2,)),
            ],
        ),
        compiler_params=pltpu.CompilerParams(
            dimension_semantics=("parallel",),
            vmem_limit_bytes=vmem_limit,
        ),
    )(ids_flat, emb_p, w1_p, b1_p, w2_p, b2_p)

    return out[:B, :O]


def reference_forward(ids, emb_table, w1, b1, w2, b2):
    emb = jnp.take(emb_table, ids, axis=0)           # [B, S, D]
    pooled = jnp.mean(emb, axis=1)                   # [B, D]
    h = jnp.maximum(pooled @ w1 + b1, 0.0)
    return jax.nn.sigmoid(h @ w2 + b2)


if __name__ == "__main__":
    # Small, forward-consistent sizes (input_size == embedding_dim).
    B, S = 2, 8
    num_embeddings, embedding_dim = 50, 32
    input_size, hidden_size, output_size = embedding_dim, 32, 4
    padding_idx = 0

    key = jax.random.PRNGKey(0)
    k_emb, k_w1, k_b1, k_w2, k_b2, k_ids = jax.random.split(key, 6)

    # nn.Embedding init ~ N(0, 1), with padding_idx row zeroed.
    emb_table = jax.random.normal(k_emb, (num_embeddings, embedding_dim),
                                  dtype=jnp.float32)
    emb_table = emb_table.at[padding_idx].set(0.0)

    # nn.Linear init ~ U(-1/sqrt(fan_in), 1/sqrt(fan_in)); stored as [in, out].
    lim1 = 1.0 / jnp.sqrt(input_size)
    w1 = jax.random.uniform(k_w1, (input_size, hidden_size),
                            minval=-lim1, maxval=lim1, dtype=jnp.float32)
    b1 = jax.random.uniform(k_b1, (1, hidden_size),
                            minval=-lim1, maxval=lim1, dtype=jnp.float32)
    lim2 = 1.0 / jnp.sqrt(hidden_size)
    w2 = jax.random.uniform(k_w2, (hidden_size, output_size),
                            minval=-lim2, maxval=lim2, dtype=jnp.float32)
    b2 = jax.random.uniform(k_b2, (1, output_size),
                            minval=-lim2, maxval=lim2, dtype=jnp.float32)

    # Token ids (include some padding tokens = 0).
    ids = jax.random.randint(k_ids, (B, S), 0, num_embeddings, dtype=jnp.int32)

    params = prepare_params(emb_table, w1, b1, w2, b2)   # one-time padding
    out = net_forward(ids, params)
    out = jax.block_until_ready(out)

    ref = reference_forward(ids, emb_table, w1, b1, w2, b2)
    assert out.shape == (B, output_size)
    assert jnp.allclose(out, ref, atol=1e-5, rtol=1e-5), "mismatch vs reference"

    print("KERNEL_OK")
</pallas_src>

<mosaic_0001>
module attributes {stable_mosaic.version = 11 : i64} {
  func.func @net_kernel(%arg0: i32, %arg1: memref<64xi32, #tpu.memory_space<smem>>, %arg2: memref<50x128xf32, #tpu.memory_space<any>>, %arg3: memref<128x128xf32, #tpu.memory_space<vmem>>, %arg4: memref<1x128xf32, #tpu.memory_space<vmem>>, %arg5: memref<128x128xf32, #tpu.memory_space<vmem>>, %arg6: memref<1x128xf32, #tpu.memory_space<vmem>>, %arg7: memref<8x128xf32, #tpu.memory_space<vmem>>, %arg8: memref<2x8x128xf32, #tpu.memory_space<vmem>>, %arg9: memref<8x128xf32, #tpu.memory_space<vmem>>, %arg10: memref<2x!tpu.dma_semaphore, #tpu.memory_space<semaphore_mem>>) attributes {dimension_semantics = [#tpu.dimension_semantics<parallel>], iteration_bounds = array<i64: 1>, scalar_prefetch = 1 : i64, scratch_operands = 3 : i64, tpu.core_type = #tpu.core_type<tc>, window_params = [{}, {pipeline_mode = #tpu.pipeline_mode<synchronous>, transform_indices = @transform_1, window_bounds = array<i64: 128, 128>}, {pipeline_mode = #tpu.pipeline_mode<synchronous>, transform_indices = @transform_2, window_bounds = array<i64: 1, 128>}, {pipeline_mode = #tpu.pipeline_mode<synchronous>, transform_indices = @transform_3, window_bounds = array<i64: 128, 128>}, {pipeline_mode = #tpu.pipeline_mode<synchronous>, transform_indices = @transform_4, window_bounds = array<i64: 1, 128>}, {transform_indices = @transform_5, window_bounds = array<i64: 8, 128>}]} {
    %c64_i32 = arith.constant 64 : i32
    %0 = arith.muli %arg0, %c64_i32 : i32
    %c0_i32 = arith.constant 0 : i32
    %c8_i32 = arith.constant 8 : i32
    %1 = arith.addi %c0_i32, %c8_i32 : i32
    %c1_i32 = arith.constant 1 : i32
    scf.for %arg11 = %c0_i32 to %1 step %c1_i32  : i32 {
      %c1_i32_23 = arith.constant 1 : i32
      %26 = arith.muli %arg11, %c1_i32_23 : i32
      %c0_i32_24 = arith.constant 0 : i32
      %27 = arith.addi %c0_i32_24, %26 : i32
      %c8_i32_25 = arith.constant 8 : i32
      %28 = arith.muli %27, %c8_i32_25 : i32
      %29 = arith.addi %0, %28 : i32
      %c0_i32_26 = arith.constant 0 : i32
      %30 = arith.addi %29, %c0_i32_26 : i32
      %31 = arith.index_cast %30 : i32 to index
      %32 = memref.load %arg1[%31] : memref<64xi32, #tpu.memory_space<smem>>
      %c0_i32_27 = arith.constant 0 : i32
      %c0_i32_28 = arith.constant 0 : i32
      %c0_i32_29 = arith.constant 0 : i32
      %33 = tpu.memref_slice %arg2[%32, %c0_i32_29] : memref<50x128xf32, #tpu.memory_space<any>> -> memref<1x128xf32, #tpu.memory_space<any>>
      %c0_i32_30 = arith.constant 0 : i32
      %34 = tpu.memref_slice %arg8[%c0_i32_27, %27, %c0_i32_30] : memref<2x8x128xf32, #tpu.memory_space<vmem>> -> memref<1x1x128xf32, #tpu.memory_space<vmem>>
      %35 = tpu.memref_squeeze %34 : memref<1x1x128xf32, #tpu.memory_space<vmem>> -> memref<1x128xf32, #tpu.memory_space<vmem>>
      %36 = tpu.memref_slice %arg10[%c0_i32_28] : memref<2x!tpu.dma_semaphore, #tpu.memory_space<semaphore_mem>> -> memref<1x!tpu.dma_semaphore, #tpu.memory_space<semaphore_mem>>
      %37 = tpu.memref_squeeze %36 : memref<1x!tpu.dma_semaphore, #tpu.memory_space<semaphore_mem>> -> memref<!tpu.dma_semaphore, #tpu.memory_space<semaphore_mem>>
      tpu.enqueue_dma source(%33 : memref<1x128xf32, #tpu.memory_space<any>>) target(%35 : memref<1x128xf32, #tpu.memory_space<vmem>>) target_semaphore(%37 : memref<!tpu.dma_semaphore, #tpu.memory_space<semaphore_mem>>)
    }
    %c8_i32_0 = arith.constant 8 : i32
    %cst = arith.constant 0.000000e+00 : f32
    %2 = vector.broadcast %cst : f32 to vector<8x128xf32>
    %c0 = arith.constant 0 : index
    %c0_1 = arith.constant 0 : index
    %3 = vector.load %arg9[%c0, %c0_1] : memref<8x128xf32, #tpu.memory_space<vmem>>, vector<8x128xf32>
    tpu.vector_store %arg9[%c0, %c0_1], %2 {strides = array<i32>} : memref<8x128xf32, #tpu.memory_space<vmem>>, vector<8x128xf32>,
    %c0_i32_2 = arith.constant 0 : i32
    %c8_i32_3 = arith.constant 8 : i32
    %4 = arith.addi %c0_i32_2, %c8_i32_3 : i32
    %c1_i32_4 = arith.constant 1 : i32
    scf.for %arg11 = %c0_i32_2 to %4 step %c1_i32_4  : i32 {
      %c1_i32_23 = arith.constant 1 : i32
      %26 = arith.muli %arg11, %c1_i32_23 : i32
      %c0_i32_24 = arith.constant 0 : i32
      %27 = arith.addi %c0_i32_24, %26 : i32
      %c1_i32_25 = arith.constant 1 : i32
      %28 = arith.andi %27, %c1_i32_25 : i32
      %c1_i32_26 = arith.constant 1 : i32
      %29 = arith.addi %27, %c1_i32_26 : i32
      %c8_i32_27 = arith.constant 8 : i32
      %30 = arith.cmpi slt, %29, %c8_i32_27 : i32
      %31 = arith.extui %30 : i1 to i32
      %c0_i32_28 = arith.constant 0 : i32
      %32 = arith.cmpi ne, %31, %c0_i32_28 : i32
      scf.if %32 {
        %c1_i32_39 = arith.constant 1 : i32
        %45 = arith.addi %27, %c1_i32_39 : i32
        %c1_i32_40 = arith.constant 1 : i32
        %46 = arith.subi %c1_i32_40, %28 : i32
        %c0_i32_41 = arith.constant 0 : i32
        %c8_i32_42 = arith.constant 8 : i32
        %47 = arith.addi %c0_i32_41, %c8_i32_42 : i32
        %c1_i32_43 = arith.constant 1 : i32
        scf.for %arg12 = %c0_i32_41 to %47 step %c1_i32_43  : i32 {
          %c1_i32_45 = arith.constant 1 : i32
          %48 = arith.muli %arg12, %c1_i32_45 : i32
          %c0_i32_46 = arith.constant 0 : i32
          %49 = arith.addi %c0_i32_46, %48 : i32
          %c8_i32_47 = arith.constant 8 : i32
          %50 = arith.muli %49, %c8_i32_47 : i32
          %51 = arith.addi %0, %50 : i32
          %52 = arith.addi %51, %45 : i32
          %53 = arith.index_cast %52 : i32 to index
          %54 = memref.load %arg1[%53] : memref<64xi32, #tpu.memory_space<smem>>
          %c0_i32_48 = arith.constant 0 : i32
          %55 = tpu.memref_slice %arg2[%54, %c0_i32_48] : memref<50x128xf32, #tpu.memory_space<any>> -> memref<1x128xf32, #tpu.memory_space<any>>
          %c0_i32_49 = arith.constant 0 : i32
          %56 = tpu.memref_slice %arg8[%46, %49, %c0_i32_49] : memref<2x8x128xf32, #tpu.memory_space<vmem>> -> memref<1x1x128xf32, #tpu.memory_space<vmem>>
          %57 = tpu.memref_squeeze %56 : memref<1x1x128xf32, #tpu.memory_space<vmem>> -> memref<1x128xf32, #tpu.memory_space<vmem>>
          %58 = tpu.memref_slice %arg10[%46] : memref<2x!tpu.dma_semaphore, #tpu.memory_space<semaphore_mem>> -> memref<1x!tpu.dma_semaphore, #tpu.memory_space<semaphore_mem>>
          %59 = tpu.memref_squeeze %58 : memref<1x!tpu.dma_semaphore, #tpu.memory_space<semaphore_mem>> -> memref<!tpu.dma_semaphore, #tpu.memory_space<semaphore_mem>>
          tpu.enqueue_dma source(%55 : memref<1x128xf32, #tpu.memory_space<any>>) target(%57 : memref<1x128xf32, #tpu.memory_space<vmem>>) target_semaphore(%59 : memref<!tpu.dma_semaphore, #tpu.memory_space<semaphore_mem>>)
        }
        %c8_i32_44 = arith.constant 8 : i32
      } else {
      }
      %c0_i32_29 = arith.constant 0 : i32
      %c0_i32_30 = arith.constant 0 : i32
      %33 = tpu.memref_slice %arg8[%28, %c0_i32_29, %c0_i32_30] : memref<2x8x128xf32, #tpu.memory_space<vmem>> -> memref<1x8x128xf32, #tpu.memory_space<vmem>>
      %34 = tpu.memref_squeeze %33 : memref<1x8x128xf32, #tpu.memory_space<vmem>> -> memref<8x128xf32, #tpu.memory_space<vmem>>
      %c0_i32_31 = arith.constant 0 : i32
      %c0_i32_32 = arith.constant 0 : i32
      %35 = tpu.memref_slice %arg8[%28, %c0_i32_31, %c0_i32_32] : memref<2x8x128xf32, #tpu.memory_space<vmem>> -> memref<1x8x128xf32, #tpu.memory_space<vmem>>
      %36 = tpu.memref_squeeze %35 : memref<1x8x128xf32, #tpu.memory_space<vmem>> -> memref<8x128xf32, #tpu.memory_space<vmem>>
      %37 = tpu.memref_slice %arg10[%28] : memref<2x!tpu.dma_semaphore, #tpu.memory_space<semaphore_mem>> -> memref<1x!tpu.dma_semaphore, #tpu.memory_space<semaphore_mem>>
      %38 = tpu.memref_squeeze %37 : memref<1x!tpu.dma_semaphore, #tpu.memory_space<semaphore_mem>> -> memref<!tpu.dma_semaphore, #tpu.memory_space<semaphore_mem>>
      tpu.wait_dma2 semaphore(%38 : memref<!tpu.dma_semaphore, #tpu.memory_space<semaphore_mem>>) src(%34 : memref<8x128xf32, #tpu.memory_space<vmem>>) dst(%36 : memref<8x128xf32, #tpu.memory_space<vmem>>)
      %c0_33 = arith.constant 0 : index
      %c0_34 = arith.constant 0 : index
      %39 = vector.load %arg9[%c0_33, %c0_34] : memref<8x128xf32, #tpu.memory_space<vmem>>, vector<8x128xf32>
      %40 = arith.index_cast %28 : i32 to index
      %c0_35 = arith.constant 0 : index
      %c0_36 = arith.constant 0 : index
      %41 = vector.load %arg8[%40, %c0_35, %c0_36] : memref<2x8x128xf32, #tpu.memory_space<vmem>>, vector<1x8x128xf32>
      %42 = vector.shape_cast %41 : vector<1x8x128xf32> to vector<8x128xf32>
      %43 = arith.addf %39, %42 : vector<8x128xf32>
      %c0_37 = arith.constant 0 : index
      %c0_38 = arith.constant 0 : index
      %44 = vector.load %arg9[%c0_37, %c0_38] : memref<8x128xf32, #tpu.memory_space<vmem>>, vector<8x128xf32>
      tpu.vector_store %arg9[%c0_37, %c0_38], %43 {strides = array<i32>} : memref<8x128xf32, #tpu.memory_space<vmem>>, vector<8x128xf32>,
    }
    %c8_i32_5 = arith.constant 8 : i32
    %c0_6 = arith.constant 0 : index
    %c0_7 = arith.constant 0 : index
    %5 = vector.load %arg9[%c0_6, %c0_7] : memref<8x128xf32, #tpu.memory_space<vmem>>, vector<8x128xf32>
    %cst_8 = arith.constant 1.250000e-01 : f32
    %6 = vector.broadcast %cst_8 : f32 to vector<8x128xf32>
    %7 = arith.mulf %5, %6 : vector<8x128xf32>
    %c0_9 = arith.constant 0 : index
    %c0_10 = arith.constant 0 : index
    %8 = vector.load %arg3[%c0_9, %c0_10] : memref<128x128xf32, #tpu.memory_space<vmem>>, vector<128x128xf32>
    %cst_11 = arith.constant dense<0.000000e+00> : vector<8x128xf32>
    %9 = tpu.matmul %7, %8, %cst_11 {dimension_numbers = #tpu.dot_dimension_numbers<[1], [0], [0], [1], [0, 0, 1, 1], [], []>} : vector<8x128xf32>, vector<128x128xf32>, vector<8x128xf32> -> vector<8x128xf32>
    %c0_12 = arith.constant 0 : index
    %c0_13 = arith.constant 0 : index
    %10 = vector.load %arg4[%c0_12, %c0_13] : memref<1x128xf32, #tpu.memory_space<vmem>>, vector<1x128xf32>
    %11 = vector.broadcast %10 : vector<1x128xf32> to vector<8x128xf32>
    %12 = arith.addf %9, %11 : vector<8x128xf32>
    %cst_14 = arith.constant 0.000000e+00 : f32
    %13 = vector.broadcast %cst_14 : f32 to vector<8x128xf32>
    %14 = arith.maximumf %12, %13 : vector<8x128xf32>
    %c0_15 = arith.constant 0 : index
    %c0_16 = arith.constant 0 : index
    %15 = vector.load %arg5[%c0_15, %c0_16] : memref<128x128xf32, #tpu.memory_space<vmem>>, vector<128x128xf32>
    %cst_17 = arith.constant dense<0.000000e+00> : vector<8x128xf32>
    %16 = tpu.matmul %14, %15, %cst_17 {dimension_numbers = #tpu.dot_dimension_numbers<[1], [0], [0], [1], [0, 0, 1, 1], [], []>} : vector<8x128xf32>, vector<128x128xf32>, vector<8x128xf32> -> vector<8x128xf32>
    %c0_18 = arith.constant 0 : index
    %c0_19 = arith.constant 0 : index
    %17 = vector.load %arg6[%c0_18, %c0_19] : memref<1x128xf32, #tpu.memory_space<vmem>>, vector<1x128xf32>
    %18 = vector.broadcast %17 : vector<1x128xf32> to vector<8x128xf32>
    %19 = arith.addf %16, %18 : vector<8x128xf32>
    %20 = arith.negf %19 : vector<8x128xf32>
    %21 = math.exp %20 : vector<8x128xf32>
    %cst_20 = arith.constant 1.000000e+00 : f32
    %22 = vector.broadcast %cst_20 : f32 to vector<8x128xf32>
    %23 = arith.addf %22, %21 : vector<8x128xf32>
    %24 = arith.divf %22, %23 : vector<8x128xf32>
    %c0_21 = arith.constant 0 : index
    %c0_22 = arith.constant 0 : index
    %25 = vector.load %arg7[%c0_21, %c0_22] : memref<8x128xf32, #tpu.memory_space<vmem>>, vector<8x128xf32>
    tpu.vector_store %arg7[%c0_21, %c0_22], %24 {strides = array<i32>} : memref<8x128xf32, #tpu.memory_space<vmem>>, vector<8x128xf32>,
    return
  }
  func.func @transform_1(%arg0: i32, %arg1: memref<64xi32, #tpu.memory_space<smem>>) -> (i32, i32) {
    %c0_i32 = arith.constant 0 : i32
    %c0_i32_0 = arith.constant 0 : i32
    %c0_i32_1 = arith.constant 0 : i32
    return %c0_i32, %c0_i32_0 : i32, i32
  }
  func.func @transform_2(%arg0: i32, %arg1: memref<64xi32, #tpu.memory_space<smem>>) -> (i32, i32) {
    %c0_i32 = arith.constant 0 : i32
    %c0_i32_0 = arith.constant 0 : i32
    %c0_i32_1 = arith.constant 0 : i32
    return %c0_i32, %c0_i32_0 : i32, i32
  }
  func.func @transform_3(%arg0: i32, %arg1: memref<64xi32, #tpu.memory_space<smem>>) -> (i32, i32) {
    %c0_i32 = arith.constant 0 : i32
    %c0_i32_0 = arith.constant 0 : i32
    %c0_i32_1 = arith.constant 0 : i32
    return %c0_i32, %c0_i32_0 : i32, i32
  }
  func.func @transform_4(%arg0: i32, %arg1: memref<64xi32, #tpu.memory_space<smem>>) -> (i32, i32) {
    %c0_i32 = arith.constant 0 : i32
    %c0_i32_0 = arith.constant 0 : i32
    %c0_i32_1 = arith.constant 0 : i32
    return %c0_i32, %c0_i32_0 : i32, i32
  }
  func.func @transform_5(%arg0: i32, %arg1: memref<64xi32, #tpu.memory_space<smem>>) -> (i32, i32) {
    %c0_i32 = arith.constant 0 : i32
    %c0_i32_0 = arith.constant 0 : i32
    return %arg0, %c0_i32 : i32, i32
  }
}

</mosaic_0001>

<bundles_post_ra>
// kernel: tpu_custom_call.1
= control target key start
LH: loop header
LB: loop body
LE: loop exit
PB: predicated region body
PF: predicated region fallthrough
CT: control target
= control target key end

     0   :  { %s507_s24 = smov [#allocation6]   ;;  %s638_s0 = inlined_call_operand.hbm [shape: s32[64], index: 0, kind: input, shape index: {}]   ;;  %s639_s1 = inlined_call_operand.hbm [shape: f32[50,128], index: 1, kind: input, shape index: {}]   ;;  %s640_s2 = inlined_call_operand.hbm [shape: f32[128,128], index: 2, kind: input, shape index: {}]   ;;  %s641_s3 = inlined_call_operand.vmem [shape: f32[1,128], index: 3, kind: input, shape index: {}]   ;;  %s642_s4 = inlined_call_operand.hbm [shape: f32[128,128], index: 4, kind: input, shape index: {}]   ;;  %s643_s5 = inlined_call_operand.vmem [shape: f32[1,128], index: 5, kind: input, shape index: {}]   ;;  %s644_s6 = inlined_call_operand.hbm [shape: f32[8,128], index: 6, kind: output, shape index: {}]  }
   0x1   :  { %s12_s23 = sshll.u32 %s638_s0, 4  ;;  %s13_s23 = int_to_ptr.hbm [resolvable:$true] %s12_s23 }
   0x2   :  { %15 = dma.hbm_to_smem %s13_s23, 16, %s507_s24, [#allocation5] }
   0x3   :  { %485 = dma.done.wait [#allocation5], 16 }
   0x4   :  { %486 = vsyncadd [#allocation5], 4294967280 }
   0x5   :  { %18 = sfence }
   0x6   :  { %19 = vsyncpa [#allocation8], 0 }
   0x7   :  { %20 = vsyncpa [#allocation11], 0 }
   0x8   :  { %21 = vsyncpa [#allocation9], 0  ;;  %s26_s27 = sshll.u32 %s640_s2, 4  ;;  %s508_s28 = smov [#allocation7]   ;;  %s27_s27 = int_to_ptr.hbm [resolvable:$true] %s26_s27 }
   0x9   :  { %s28_s29 = sshll.u32 %s508_s28, 4  ;;  %s41_s0 = sshll.u32 %s642_s4, 4  ;;  %s29_s29 = int_to_ptr.vmem [resolvable:$true] %s28_s29  ;;  %s42_s0 = int_to_ptr.hbm [resolvable:$true] %s41_s0 }
   0xa   :  { %s509_s8 = smov 128   ;;  %s510_s9 = smov 8  }
   0xb   :  { %34 = dma.hbm_to_vmem [thread:$0]  %s27_s27, 2048, %s29_s29, [#allocation8], %s509_s8, %s509_s8, %s510_s9  }
   0xc   :  { %s511_s10 = smov [#allocation10]  }
   0xd   :  { %s43_s11 = sshll.u32 %s511_s10, 4  ;;  %s44_s11 = int_to_ptr.vmem [resolvable:$true] %s43_s11 }
   0xe   :  { %49 = dma.hbm_to_vmem [thread:$0]  %s42_s0, 2048, %s44_s11, [#allocation11], %s509_s8, %s509_s8, %s510_s9  }
   0xf   :  { %487 = dma.done.wait [#allocation8], 2048  }
  0x10   :  { %488 = vsyncadd [#allocation8], 4294965248 }
  0x11   :  { %489 = dma.done.wait [#allocation11], 2048  }
  0x12   :  { %490 = vsyncadd [#allocation11], 4294965248  ;;  %s559_s2 = smov 0  }
  0x13 LB: > { %s296_s4 = sshll.u32 %s497_s2, 3  ;;  %s71_s13 = scalar_lea.vmem [#allocation2], %s497_s2  ;;  %s497_s2 = sphi %s559_s2, %s66_s2  }
  0x14   : > { %s69_s12 = sld [smem:[#allocation6 + %s296_s4]]  ;;  %s81_s14 = sshll.u32 %s71_s13, 4  ;;  %s82_s14 = int_to_ptr.vmem [resolvable:$true] %s81_s14 }
  0x15   : > { %s405_s23 = scalar_lea.hbm %s639_s1, 56 }
  0x1a   : > { %s70_s17 = scalar_lea.hbm %s639_s1, %s69_s12 }
  0x1b   : > { %s79_s18 = sshll.u32 %s70_s17, 4  ;;  %s80_s18 = int_to_ptr.hbm [resolvable:$true] %s79_s18 }
  0x1c   : > { %s401_s19 = sshra.s32 %s80_s18, 4  ;;  %s402_s19 = int_to_ptr.hbm [resolvable:$true] %s401_s19 }
  0x1d   : > { %s403_s20 = scalar_lea.hbm %s402_s19, 1  ;;  %p406_p1 = scmp.lt.s32.totalorder %s402_s19, %s639_s1 }
  0x1e   : > { %p404_p0 = scmp.ne.s32.totalorder %s402_s19, %s403_s20  ;;  %p407_p2 = scmp.lt.s32.totalorder %s405_s23, %s403_s20 }
  0x20   : > { %p408_p3 = por %p407_p2, %p406_p1 }
  0x22   : > { %p409_p4 = pnand %p408_p3, %p404_p0 }
  0x24   : > { %412 = shalt.err (!%p409_p4)  }
  0x25   : > { %s413_s28 = sshra.s32 %s82_s14, 4  ;;  %s512_s30 = smov [#allocation2]   ;;  %s414_s28 = int_to_ptr.vmem [resolvable:$true] %s413_s28 }
  0x26   : > { %s415_s29 = scalar_lea.vmem %s414_s28, 1  ;;  %s579_s7 = scalar_lea.vmem %s512_s30, 16 }
  0x27   : > { %p416_p5 = scmp.ne.s32.totalorder %s414_s28, %s415_s29  ;;  %p418_p6 = scmp.lt.s32.totalorder %s414_s28, [#allocation2] }
  0x28   : > { %p419_p7 = scmp.lt.s32.totalorder %s579_s7, %s415_s29 }
  0x2a   : > { %p420_p8 = por %p419_p7, %p418_p6 }
  0x2c   : > { %p421_p9 = pnand %p420_p8, %p416_p5 }
  0x2e   : > { %424 = shalt.err (!%p421_p9)  }
  0x2f   : > { %84 = dma.hbm_to_vmem [thread:$0]  %s80_s18, 16, %s82_s14, [#allocation4] }
  0x30   : > { %s66_s2 = sadd.s32 1, %s497_s2  }
  0x31   : > { %p63_p10 = scmp.ge.s32.totalorder %s66_s2, 8  }
  0x32   :  { %v513_v0 = vmov (%p63_p10), 0.0   ;;  %s585_s0 = smov (%p63_p10), 0  }
  0x33   :  { %65 = sbr.rel (!%p63_p10) target bundleno = 19 (0x13), region = 85  ;;  %85 = vst [vmem:[#allocation3] sm:$0xff] (%p63_p10), %v513_v0 }
  0x38 LB: > { %s588_s8 = sand.u32 1, %s501_s0  ;;  %s590_s0 = sadd.s32 1, %s501_s0   ;;  %s501_s0 = sphi %s585_s0, %s590_s0  }
  0x39   : > { %p297_p11 = scmp.ge.s32.totalorder %s590_s0, 8 }
  0x3a   : > { %s98_s9 = ssub.s32 (!%p297_p11), 1, %s588_s8  ;;  %s596_s10 = smov (!%p297_p11), 0  }
  0x3b   : > { %97 = sbr.rel (%p297_p11) target bundleno = 101 (0x65), region = 47 }
  0x40 LB: >> { %s299_s11 = sshll.u32 %s98_s9, 3  ;;  %s298_s2 = sshll.u32 %s505_s10, 3  ;;  %s505_s10 = sphi %s596_s10, %s104_s10  }
  0x41   : >> { %s111_s4 = sadd.s32 %s505_s10, %s299_s11  ;;  %s107_s12 = sadd.s32 %s298_s2, %s590_s0 }
  0x42   : >> { %s108_s13 = sld [smem:[#allocation6 + %s107_s12]]  ;;  %s112_s14 = scalar_lea.vmem [#allocation2], %s111_s4 }
  0x43   : >> { %s123_s15 = sshll.u32 %s112_s14, 4  ;;  %s113_s20 = scalar_lea.sflag [#allocation4], %s98_s9  ;;  %s124_s15 = int_to_ptr.vmem [resolvable:$true] %s123_s15 }
  0x48   : >> { %s109_s18 = scalar_lea.hbm %s639_s1, %s108_s13 }
  0x49   : >> { %s121_s19 = sshll.u32 %s109_s18, 4  ;;  %s122_s19 = int_to_ptr.hbm [resolvable:$true] %s121_s19 }
  0x4a   : >> { %s425_s21 = sshra.s32 %s122_s19, 4  ;;  %s426_s21 = int_to_ptr.hbm [resolvable:$true] %s425_s21 }
  0x4b   : >> { %s427_s22 = scalar_lea.hbm %s426_s21, 1  ;;  %p430_p13 = scmp.lt.s32.totalorder %s426_s21, %s639_s1 }
  0x4c   : >> { %p428_p12 = scmp.ne.s32.totalorder %s426_s21, %s427_s22  ;;  %p431_p0 = scmp.lt.s32.totalorder %s405_s23, %s427_s22 }
  0x4e   : >> { %p432_p1 = por %p431_p0, %p430_p13 }
  0x50   : >> { %p433_p2 = pnand %p432_p1, %p428_p12 }
  0x52   : >> { %436 = shalt.err (!%p433_p2)  }
  0x53   : >> { %s437_s28 = sshra.s32 %s124_s15, 4  ;;  %s438_s28 = int_to_ptr.vmem [resolvable:$true] %s437_s28 }
  0x54   : >> { %s439_s29 = scalar_lea.vmem %s438_s28, 1  ;;  %p442_p4 = scmp.lt.s32.totalorder %s438_s28, [#allocation2] }
  0x55   : >> { %p440_p3 = scmp.ne.s32.totalorder %s438_s28, %s439_s29  ;;  %p443_p5 = scmp.lt.s32.totalorder %s579_s7, %s439_s29 }
  0x57   : >> { %p444_p6 = por %p443_p5, %p442_p4 }
  0x59   : >> { %p445_p7 = pnand %p444_p6, %p440_p3 }
  0x5b   : >> { %448 = shalt.err (!%p445_p7)  }
  0x5c   : >> { %126 = dma.hbm_to_vmem [thread:$0]  %s122_s19, 16, %s124_s15, %s113_s20 }
  0x5d   : >> { %s104_s10 = sadd.s32 1, %s505_s10  }
  0x5e   : >> { %p101_p8 = scmp.ge.s32.totalorder %s104_s10, 8  }
  0x60   : > { %103 = sbr.rel (!%p101_p8) target bundleno = 64 (0x40), region = 96 }
  0x65 PF: > { %s300_s30 = sshll.u32 %s588_s8, 3  ;;  %s129_s2 = scalar_lea.sflag [#allocation4], %s588_s8 }
  0x66   : > { %s128_s11 = scalar_lea.vmem [#allocation2], %s300_s30 }
  0x67   : > { %491 = dma.done.wait %s129_s2, 128 }
  0x68   : > { %492 = vsyncadd %s129_s2, 4294967168  ;;  %v133_v1 = vld [vmem:[#allocation3] sm:$0xff]  ;;  %v134_v2 = vld [vmem:[%s128_s11] sm:$0xff]  ;;  %90 = sbr.rel (!%p297_p11) target bundleno = 56 (0x38), region = 107 }
  0x69   : > { %v135_v3 = vadd.f32 %v134_v2, %v133_v1  ;;  %v154_v4 = vld [vmem:[#allocation7 + $0x78] sm:$0xff] (%p297_p11)  ;;  %v153_v5 = vld [vmem:[#allocation7 + $0x70] sm:$0xff] (%p297_p11)  ;;  %v152_v6 = vld [vmem:[#allocation7 + $0x68] sm:$0xff] (%p297_p11) }
  0x6a   :  { %159 = vmatpush.msra.mxu0 (%p297_p11), %v154_v4  ;;  %v151_v7 = vld [vmem:[#allocation7 + $0x60] sm:$0xff] (%p297_p11)  ;;  %v195_v8 = vld [vmem:[#allocation10 + $0x78] sm:$0xff] (%p297_p11)  ;;  %v194_v10 = vld [vmem:[#allocation10 + $0x70] sm:$0xff] (%p297_p11) }
  0x6b   : > { %136 = vst [vmem:[#allocation3] sm:$0xff] %v135_v3  ;;  %v150_v9 = vld [vmem:[#allocation7 + $0x58] sm:$0xff] (%p297_p11)  ;;  %200 = vmatpush.msra.mxu1 (%p297_p11), %v195_v8  ;;  %v193_v11 = vld [vmem:[#allocation10 + $0x68] sm:$0xff] (%p297_p11)  ;;  %v149_v12 = vld [vmem:[#allocation7 + $0x50] sm:$0xff] (%p297_p11) }
  0x6c   :  { %160 = vmatpush.msra.mxu0 (%p297_p11), %v153_v5  ;;  %v192_v13 = vld [vmem:[#allocation10 + $0x60] sm:$0xff] (%p297_p11)  ;;  %v148_v14 = vld [vmem:[#allocation7 + $0x48] sm:$0xff] (%p297_p11)  ;;  %v191_v15 = vld [vmem:[#allocation10 + $0x58] sm:$0xff] (%p297_p11) }
  0x6d   :  { %201 = vmatpush.msra.mxu1 %v194_v10  ;;  %v147_v16 = vld [vmem:[#allocation7 + $0x40] sm:$0xff]  ;;  %v190_v17 = vld [vmem:[#allocation10 + $0x50] sm:$0xff]  ;;  %v146_v18 = vld [vmem:[#allocation7 + $0x38] sm:$0xff] }
  0x6e   :  { %161 = vmatpush.msra.mxu0 %v152_v6  ;;  %v189_v19 = vld [vmem:[#allocation10 + $0x48] sm:$0xff]  ;;  %v145_v20 = vld [vmem:[#allocation7 + $0x30] sm:$0xff]  ;;  %v188_v21 = vld [vmem:[#allocation10 + $0x40] sm:$0xff] }
  0x6f   :  { %202 = vmatpush.msra.mxu1 %v193_v11  ;;  %v144_v22 = vld [vmem:[#allocation7 + $0x28] sm:$0xff]  ;;  %v187_v23 = vld [vmem:[#allocation10 + $0x38] sm:$0xff]  ;;  %v143_v24 = vld [vmem:[#allocation7 + $0x20] sm:$0xff] }
  0x70   :  { %162 = vmatpush.msra.mxu0 %v151_v7  ;;  %v186_v25 = vld [vmem:[#allocation10 + $0x30] sm:$0xff]  ;;  %v142_v26 = vld [vmem:[#allocation7 + $0x18] sm:$0xff]  ;;  %v185_v27 = vld [vmem:[#allocation10 + $0x28] sm:$0xff] }
  0x71   :  { %203 = vmatpush.msra.mxu1 %v192_v13  ;;  %v141_v28 = vld [vmem:[#allocation7 + $0x10] sm:$0xff]  ;;  %v184_v30 = vld [vmem:[#allocation10 + $0x20] sm:$0xff]  ;;  %v140_v31 = vld [vmem:[#allocation7 + $0x8] sm:$0xff] }
  0x72   :  { %163 = vmatpush.msra.mxu0 %v150_v9  ;;  %v137_v29 = vld [vmem:[#allocation3] sm:$0xff]  ;;  %v139_v33 = vld [vmem:[#allocation7] sm:$0xff]  ;;  %v182_v35 = vld [vmem:[#allocation10 + $0x10] sm:$0xff] }
  0x73   :  { %204 = vmatpush.msra.mxu1 %v191_v15  ;;  %v183_v32 = vld [vmem:[#allocation10 + $0x18] sm:$0xff]  ;;  %v138_v34 = vmul.f32 0.125, %v137_v29  ;;  %v181_v36 = vld [vmem:[#allocation10 + $0x8] sm:$0xff]  ;;  %v180_v37 = vld [vmem:[#allocation10] sm:$0xff] }
  0x74   :  { %164 = vmatpush.msra.mxu0 %v149_v12  ;;  %v335_v38 = vld [vmem:[%s641_s3] ss:$0 sm:$0xff]  ;;  %s514_s3 = smov [#allocation12]  }
  0x75   :  { %205 = vmatpush.msra.mxu1 %v190_v17  ;;  %v336_v42 = vld [vmem:[%s643_s5] ss:$0 sm:$0xff]  ;;  %s245_s8 = sshll.u32 %s514_s3, 4  ;;  %s247_s5 = sshll.u32 %s644_s6, 4  ;;  %s246_s8 = int_to_ptr.vmem [resolvable:$true] %s245_s8  ;;  %s248_s5 = int_to_ptr.hbm [resolvable:$true] %s247_s5 }
  0x76   :  { %165 = vmatpush.msra.mxu0 %v148_v14 }
  0x77   :  { %206 = vmatpush.msra.mxu1 %v189_v19 }
  0x78   :  { %166 = vmatpush.msra.mxu0 %v147_v16 }
  0x79   :  { %207 = vmatpush.msra.mxu1 %v188_v21 }
  0x7a   :  { %167 = vmatpush.msra.mxu0 %v146_v18 }
  0x7b   :  { %208 = vmatpush.msra.mxu1 %v187_v23 }
  0x7c   :  { %168 = vmatpush.msra.mxu0 %v145_v20 }
  0x7d   :  { %209 = vmatpush.msra.mxu1 %v186_v25 }
  0x7e   :  { %169 = vmatpush.msra.mxu0 %v144_v22 }
  0x7f   :  { %210 = vmatpush.msra.mxu1 %v185_v27 }
  0x80   :  { %170 = vmatpush.msra.mxu0 %v143_v24 }
  0x81   :  { %211 = vmatpush.msra.mxu1 %v184_v30 }
  0x82   :  { %171 = vmatpush.msra.mxu0 %v142_v26 }
  0x83   :  { %212 = vmatpush.msra.mxu1 %v183_v32 }
  0x84   :  { %172 = vmatpush.msra.mxu0 %v141_v28 }
  0x85   :  { %213 = vmatpush.msra.mxu1 %v182_v35 }
  0x86   :  { %173 = vmatpush.msra.mxu0 %v140_v31 }
  0x87   :  { %214 = vmatpush.msra.mxu1 %v181_v36 }
  0x88   :  { %174 = vmatpush.msra.mxu0 %v139_v33 }
  0x89   :  { %175 = vmatmul.f32.vlgmr.msra.gmra.mxu0 %v138_v34  ;;  %215 = vmatpush.msra.mxu1 %v180_v37 }
 0x106   :  { %v176_v39 = vpop.f32.mrf.mxu0 }
 0x107   :  { %v177_v40 = vadd.f32 %v335_v38, %v176_v39 }
 0x109   :  { %v179_v41 = vmax.f32 %v177_v40, 0.0 }
 0x10b   :  { %216 = vmatmul.f32.vlgmr.msra.gmra.mxu1 %v179_v41 }
 0x188   :  { %v217_v43 = vpop.f32.mrf.mxu1 }
 0x189   :  { %v218_v44 = vadd.f32 %v336_v42, %v217_v43 }
 0x18b   :  { %v301_v45 = vmul.f32 -1.442695, %v218_v44 }
 0x18d   :  { %337 = vpow2.f32 %v301_v45 }
 0x193   :  { %v338_v46 = vpop.eup %337 }
 0x194   :  { %v223_v47 = vadd.f32 1.0, %v338_v46 }
 0x196   :  { %339 = vrcp.f32 %v223_v47  ;;  %v235_v51 = vand.u32 2147483648, %v223_v47  ;;  %v233_v53 = vand.u32 2147483647, %v223_v47  ;;  %vm229_vm1 = vweird.f32 %v223_v47 }
 0x198   :  { %v236_v55 = vor.u32 1.1754944e-38, %v235_v51  ;;  %vm234_vm3 = vcmp.eq.f32.partialorder %v233_v53, 8.507059e+37 }
 0x19c   :  { %v340_v48 = vpop.eup %339 }
 0x19d   :  { %v225_v49 = vmul.f32 %v340_v48, %v223_v47  ;;  %vm230_vm0 = vweird.f32 %v340_v48 }
 0x19e   :  { %vm231_vm2 = vmor %vm229_vm1, %vm230_vm0 }
 0x19f   :  { %v226_v50 = vsub.f32 1.0, %v225_v49 }
 0x1a1   :  { %v227_v52 = vmul.f32 %v340_v48, %v226_v50 }
 0x1a3   :  { %v228_v54 = vadd.f32 %v340_v48, %v227_v52 }
 0x1a5   :  { %v232_v56 = vsel %vm231_vm2, %v340_v48, %v228_v54 }
 0x1a6   :  { %v237_v57 = vsel %vm234_vm3, %v236_v55, %v232_v56 }
 0x1a7   :  { %239 = vst [vmem:[#allocation12] sm:$0xff] %v237_v57 }
 0x1a8   :  { %250 = dma.vmem_to_hbm [thread:$0]  %s246_s8, 128, %s248_s5, [#allocation9]  }
 0x1a9   :  { %493 = dma.done.wait [#allocation9], 128  }
 0x1aa   :  { %494 = vsyncadd [#allocation9], 4294967168 }
 0x1ab   :  { %255 = vsyncpa [#allocation8], 1 }
 0x1ac   :  { %256 = vsyncpa [#allocation11], 1 }
 0x1ad   :  { %257 = vsyncpa [#allocation9], 1 }
 0x1ae   :  { %258 = vsyncmov [#allocation4] }
 0x1b1   :  { %s259_s12 = vpop.sfrf %258 }
 0x1b2   :  { %p302_p9 = scmp.ne.s32.totalorder %s259_s12, 0 }
 0x1b4   :  { %263 = shalt.err (%p302_p9)  }
 0x1b5   :  { %265 = vsyncmov [#allocation4 + $0x1] }
 0x1b8   :  { %s266_s6 = vpop.sfrf %265 }
 0x1b9   :  { %p303_p10 = scmp.ne.s32.totalorder %s266_s6, 0 }
 0x1bb   :  { %270 = shalt.err (%p303_p10)  }

</bundles_post_ra>
